<compile_context>
chip_gen: v7x
topology: tpu7x:2x2x1
jax: 0.10.0
libtpu: 0.0.40
codegen_flags: <defaults>
</compile_context>

<pallas_src>
import functools

import jax
import jax.numpy as jnp
from jax.experimental import pallas as pl
from jax.experimental.pallas import tpu as pltpu


# ----------------------------------------------------------------------------
# Fused ResBlock kernel (one batch element per grid step)
# ----------------------------------------------------------------------------
def _resblock_kernel(x_ref, b1d_ref, s1d_ref, b2_ref, s2_ref, o_ref,
                     xp_ref, op_ref, *, H, W, Cin, Cout, pooling):
    """conv1+BN+ELU, conv2+BN, downsample conv+BN, residual add, optional pool.

    x_ref:   (H, W*Cin)            lane-dense input rows (lane index = w*Cin + c)
    b1d_ref: (3, W*Cin, 2*W*Cout)  banded weights, [conv1 | downsample] per ky
    s1d_ref: (1, 2*W*Cout)         folded bias + BN shift, [conv1 | downsample]
    b2_ref:  (3, W*Cout, W*Cout)   banded weights for conv2, per ky
    s2_ref:  (1, W*Cout)           folded bias + BN shift for conv2
    o_ref:   (Ho, Wo*Cout)         lane-dense output
    xp_ref:  (H+2, W*Cin)  VMEM    vertically zero-padded input
    op_ref:  (H+2, W*Cout) VMEM    vertically zero-padded ELU(conv1) output
    """
    wc_in = W * Cin
    wc_out = W * Cout
    f32 = jnp.float32

    # Vertical 1-row zero halo in VMEM scratch; the horizontal halo is already
    # folded into the banded weights (clipped band == zero padding), so no
    # lane-direction padding is needed anywhere.  Only the two halo rows need
    # zeroing — the interior rows are fully overwritten each grid step.
    zero_in = jnp.zeros((1, wc_in), f32)
    xp_ref[0:1, :] = zero_in
    xp_ref[H + 1:H + 2, :] = zero_in
    xp_ref[1:H + 1, :] = x_ref[...]

    # conv1+bn1 and downsample+bn_d share the same input: one accumulation
    # stream with 2*W*Cout lane-dense output columns (3 MXU matmuls total).
    acc1 = jnp.broadcast_to(s1d_ref[...], (H, 2 * wc_out))
    for ky in range(3):
        acc1 = acc1 + jnp.dot(xp_ref[ky:ky + H, :], b1d_ref[ky],
                              preferred_element_type=f32)

    out1 = acc1[:, :wc_out]        # conv1 + bn1        (128-lane aligned slice)
    residual = acc1[:, wc_out:]    # downsample + bn_d  (128-lane aligned slice)

    # ELU(alpha=1). exp(min(y,0)) keeps the unselected branch finite
    # (expm1 would be marginally more accurate near 0 but exp is guaranteed
    # to lower on all TPU generations; exp runs on the EUP slot).
    out1 = jnp.where(out1 > 0, out1, jnp.exp(jnp.minimum(out1, 0.0)) - 1.0)

    # conv2 + bn2 over the ELU output, still entirely in VMEM (never hits HBM).
    zero_out = jnp.zeros((1, wc_out), f32)
    op_ref[0:1, :] = zero_out
    op_ref[H + 1:H + 2, :] = zero_out
    op_ref[1:H + 1, :] = out1

    acc2 = residual + s2_ref[...]
    for ky in range(3):
        acc2 = acc2 + jnp.dot(op_ref[ky:ky + H, :], b2_ref[ky],
                              preferred_element_type=f32)

    if pooling:
        # 2x2 / stride-2 max pool (assumes even H, W like nn.MaxPool2d(2, 2)
        # on even inputs).
        # TODO(synk): this branch uses minor-dim reshapes; if the pooled
        # variant becomes hot, switch to a pltpu.roll + select scheme.
        yp = jnp.max(acc2.reshape(H // 2, 2, wc_out), axis=1)      # pool along H
        yp = yp.reshape(H // 2, W // 2, 2 * Cout)
        yp = jnp.maximum(yp[:, :, :Cout], yp[:, :, Cout:])         # pool along W
        o_ref[...] = yp.reshape(H // 2, (W // 2) * Cout).astype(o_ref.dtype)
    else:
        o_ref[...] = acc2.astype(o_ref.dtype)


# ----------------------------------------------------------------------------
# Parameter init (deterministic; mimics nn.Conv2d / nn.BatchNorm2d defaults)
# ----------------------------------------------------------------------------
def _conv_init(key, cin, cout):
    fan_in = cin * 3 * 3
    bound = 1.0 / (fan_in ** 0.5)
    kw, kb = jax.random.split(key)
    # weight stored as HWIO (3, 3, Cin, Cout)
    w = jax.random.uniform(kw, (3, 3, cin, cout), jnp.float32, -bound, bound)
    b = jax.random.uniform(kb, (cout,), jnp.float32, -bound, bound)
    return w, b


def _bn_eval_affine(cout, eps=1e-5):
    gamma = jnp.ones((cout,), jnp.float32)
    beta = jnp.zeros((cout,), jnp.float32)
    mean = jnp.zeros((cout,), jnp.float32)
    var = jnp.ones((cout,), jnp.float32)
    scale = gamma / jnp.sqrt(var + eps)
    shift = beta - mean * scale
    return scale, shift


def init_resblock_params(key, in_channels, out_channels):
    k1, k2, k3 = jax.random.split(key, 3)
    w1, b1 = _conv_init(k1, in_channels, out_channels)
    w2, b2 = _conv_init(k2, out_channels, out_channels)
    wd, bd = _conv_init(k3, in_channels, out_channels)
    s1, t1 = _bn_eval_affine(out_channels)
    s2, t2 = _bn_eval_affine(out_channels)
    sd, td = _bn_eval_affine(out_channels)
    return dict(w1=w1, b1=b1, scale1=s1, shift1=t1,
                w2=w2, b2=b2, scale2=s2, shift2=t2,
                wd=wd, bd=bd, scaled=sd, shiftd=td)


# ----------------------------------------------------------------------------
# One-time weight packing: BN folding + banded matmul operands
# ----------------------------------------------------------------------------
def _banded(w_hwio, width):
    """(3,3,K,Co) HWIO weights -> (3, width*K, width*Co) banded matmul operands.

    Row index = wi*K + c (input column, input channel); column index =
    w*Co + co (output column, output channel).  The three horizontal taps and
    the zero padding at the left/right image edge are encoded by the clipped
    band, so the kernel needs no horizontal halo.
    """
    mats = []
    for ky in range(3):
        band = None
        for kx in range(3):
            sel = jnp.eye(width, k=1 - kx, dtype=jnp.float32)  # input col = w + kx - 1
            term = jnp.kron(sel, w_hwio[ky, kx])
            band = term if band is None else band + term
        mats.append(band)
    return jnp.stack(mats)


def pack_resblock_params(params, width):
    """Fold conv bias + eval-mode BN into the weights and pre-build the banded
    matmul operands (one-time precompute; the kernel epilogue is just
    `acc + shift` (+ ELU))."""
    def fold(w, b, scale, shift):
        return w * scale, b * scale + shift          # (3,3,K,Co)*(Co,), (Co,)

    w1f, s1f = fold(params["w1"], params["b1"], params["scale1"], params["shift1"])
    w2f, s2f = fold(params["w2"], params["b2"], params["scale2"], params["shift2"])
    wdf, sdf = fold(params["wd"], params["bd"], params["scaled"], params["shiftd"])

    cout = w1f.shape[-1]
    # conv1 and the downsample conv read the same input: concatenate their
    # banded weights along the output columns (first W*Cout cols -> conv1,
    # next W*Cout cols -> downsample) so one matmul stream produces both.
    b1d = jnp.concatenate([_banded(w1f, width), _banded(wdf, width)], axis=-1)
    b2 = _banded(w2f, width)
    s1d = jnp.concatenate([jnp.tile(s1f, width),
                           jnp.tile(sdf, width)]).reshape(1, 2 * width * cout)
    s2 = jnp.tile(s2f, width).reshape(1, width * cout)
    return dict(b1d=b1d, s1d=s1d, b2=b2, s2=s2)


# ----------------------------------------------------------------------------
# ResBlock forward
# ----------------------------------------------------------------------------
def resblock_forward(x_nchw, packed, *, downsample=True, pooling=False):
    if not downsample:
        # Matches PyTorch: forward uses `residual`, undefined otherwise.
        raise NameError("ResBlock.forward requires downsample=True "
                        "(`residual` is otherwise undefined).")
    N, Cin, H, W = x_nchw.shape
    Cout = packed["b2"].shape[-1] // W
    Ho, Wo = (H // 2, W // 2) if pooling else (H, W)

    # NCHW -> NHWC -> (N, H, W*Cin): channels merged into the lane dimension.
    x2d = jnp.transpose(x_nchw, (0, 2, 3, 1)).reshape(N, H, W * Cin)

    # NOTE: on v6e/v7x the matmul operands could be cast to bf16 (keeping f32
    # accumulation) to halve DMA bytes; kept in f32 to match PyTorch numerics.
    kern = functools.partial(_resblock_kernel, H=H, W=W, Cin=Cin, Cout=Cout,
                             pooling=pooling)
    out2d = pl.pallas_call(
        kern,
        out_shape=jax.ShapeDtypeStruct((N, Ho, Wo * Cout), jnp.float32),
        grid_spec=pltpu.PrefetchScalarGridSpec(
            num_scalar_prefetch=0,
            grid=(N,),
            in_specs=[
                pl.BlockSpec((pl.Squeezed(), H, W * Cin), lambda n: (n, 0, 0)),
                pl.BlockSpec((3, W * Cin, 2 * W * Cout), lambda n: (0, 0, 0)),
                pl.BlockSpec((1, 2 * W * Cout), lambda n: (0, 0)),
                pl.BlockSpec((3, W * Cout, W * Cout), lambda n: (0, 0, 0)),
                pl.BlockSpec((1, W * Cout), lambda n: (0, 0)),
            ],
            out_specs=pl.BlockSpec((pl.Squeezed(), Ho, Wo * Cout),
                                   lambda n: (n, 0, 0)),
            scratch_shapes=[
                pltpu.VMEM((H + 2, W * Cin), jnp.float32),
                pltpu.VMEM((H + 2, W * Cout), jnp.float32),
            ],
        ),
        compiler_params=pltpu.CompilerParams(
            dimension_semantics=("parallel",)),
    )(x2d, packed["b1d"], packed["s1d"], packed["b2"], packed["s2"])

    out = out2d.reshape(N, Ho, Wo, Cout)      # channel-minor: metadata reshape
    # dropout(p=0.5): eval-mode identity.
    return jnp.transpose(out, (0, 3, 1, 2))   # NHWC -> NCHW


# ----------------------------------------------------------------------------
# Plain-XLA reference (for a loose numerical sanity check)
# ----------------------------------------------------------------------------
def _reference_forward(x_nchw, params):
    x = jnp.transpose(x_nchw, (0, 2, 3, 1))

    def conv_bn(v, w, b, scale, shift):
        y = jax.lax.conv_general_dilated(
            v, w, window_strides=(1, 1), padding=((1, 1), (1, 1)),
            dimension_numbers=("NHWC", "HWIO", "NHWC"))
        return (y + b) * scale + shift

    out = conv_bn(x, params["w1"], params["b1"], params["scale1"], params["shift1"])
    out = jnp.where(out > 0, out, jnp.exp(jnp.minimum(out, 0.0)) - 1.0)
    out = conv_bn(out, params["w2"], params["b2"], params["scale2"], params["shift2"])
    out = out + conv_bn(x, params["wd"], params["bd"], params["scaled"],
                        params["shiftd"])
    return jnp.transpose(out, (0, 3, 1, 2))


if __name__ == "__main__":
    key = jax.random.PRNGKey(0)
    kx, kp = jax.random.split(key)

    in_channels, out_channels = 4, 8
    N, H, W = 2, 16, 16
    x = jax.random.normal(kx, (N, in_channels, H, W), jnp.float32)  # NCHW

    params = init_resblock_params(kp, in_channels, out_channels)
    packed = pack_resblock_params(params, W)

    fwd = jax.jit(functools.partial(resblock_forward,
                                    downsample=True, pooling=False))
    out = jax.block_until_ready(fwd(x, packed))
    assert out.shape == (N, out_channels, H, W), out.shape

    # Loose-tolerance check vs. plain XLA (tolerant of MXU bf16-pass rounding).
    ref = _reference_forward(x, params)
    assert jnp.allclose(out, ref, atol=5e-2, rtol=5e-2), (
        float(jnp.max(jnp.abs(out - ref))))

    print("KERNEL_OK")
</pallas_src>

<mosaic_0001>
module attributes {stable_mosaic.version = 11 : i64} {
  func.func @_resblock_kernel(%arg0: i32, %arg1: memref<1x16x64xf32, #tpu.memory_space<vmem>>, %arg2: memref<3x64x256xf32, #tpu.memory_space<vmem>>, %arg3: memref<1x256xf32, #tpu.memory_space<vmem>>, %arg4: memref<3x128x128xf32, #tpu.memory_space<vmem>>, %arg5: memref<1x128xf32, #tpu.memory_space<vmem>>, %arg6: memref<1x16x128xf32, #tpu.memory_space<vmem>>, %arg7: memref<18x64xf32, #tpu.memory_space<vmem>>, %arg8: memref<18x128xf32, #tpu.memory_space<vmem>>) attributes {dimension_semantics = [#tpu.dimension_semantics<parallel>], iteration_bounds = array<i64: 2>, scalar_prefetch = 0 : i64, scratch_operands = 2 : i64, tpu.core_type = #tpu.core_type<tc>, window_params = [{transform_indices = @transform_0, window_bounds = array<i64: 1, 16, 64>}, {pipeline_mode = #tpu.pipeline_mode<synchronous>, transform_indices = @transform_1, window_bounds = array<i64: 3, 64, 256>}, {pipeline_mode = #tpu.pipeline_mode<synchronous>, transform_indices = @transform_2, window_bounds = array<i64: 1, 256>}, {pipeline_mode = #tpu.pipeline_mode<synchronous>, transform_indices = @transform_3, window_bounds = array<i64: 3, 128, 128>}, {pipeline_mode = #tpu.pipeline_mode<synchronous>, transform_indices = @transform_4, window_bounds = array<i64: 1, 128>}, {transform_indices = @transform_5, window_bounds = array<i64: 1, 16, 128>}]} {
    %cst = arith.constant 0.000000e+00 : f32
    %0 = vector.broadcast %cst : f32 to vector<1x64xf32>
    %c0 = arith.constant 0 : index
    %c0_0 = arith.constant 0 : index
    %1 = vector.load %arg7[%c0, %c0_0] : memref<18x64xf32, #tpu.memory_space<vmem>>, vector<1x64xf32>
    tpu.vector_store %arg7[%c0, %c0_0], %0 {strides = array<i32>} : memref<18x64xf32, #tpu.memory_space<vmem>>, vector<1x64xf32>,
    %c17 = arith.constant 17 : index
    %c0_1 = arith.constant 0 : index
    %2 = vector.load %arg7[%c17, %c0_1] : memref<18x64xf32, #tpu.memory_space<vmem>>, vector<1x64xf32>
    tpu.vector_store %arg7[%c17, %c0_1], %0 {strides = array<i32>} : memref<18x64xf32, #tpu.memory_space<vmem>>, vector<1x64xf32>,
    %c0_2 = arith.constant 0 : index
    %c0_3 = arith.constant 0 : index
    %c0_4 = arith.constant 0 : index
    %3 = vector.load %arg1[%c0_2, %c0_3, %c0_4] : memref<1x16x64xf32, #tpu.memory_space<vmem>>, vector<1x16x64xf32>
    %4 = vector.shape_cast %3 : vector<1x16x64xf32> to vector<16x64xf32>
    %c1 = arith.constant 1 : index
    %c0_5 = arith.constant 0 : index
    %5 = vector.load %arg7[%c1, %c0_5] : memref<18x64xf32, #tpu.memory_space<vmem>>, vector<16x64xf32>
    tpu.vector_store %arg7[%c1, %c0_5], %4 {strides = array<i32>} : memref<18x64xf32, #tpu.memory_space<vmem>>, vector<16x64xf32>,
    %c0_6 = arith.constant 0 : index
    %c0_7 = arith.constant 0 : index
    %6 = vector.load %arg3[%c0_6, %c0_7] : memref<1x256xf32, #tpu.memory_space<vmem>>, vector<1x256xf32>
    %7 = vector.shape_cast %6 : vector<1x256xf32> to vector<1x256xf32>
    %8 = vector.broadcast %7 : vector<1x256xf32> to vector<16x256xf32>
    %c0_8 = arith.constant 0 : index
    %c0_9 = arith.constant 0 : index
    %9 = vector.load %arg7[%c0_8, %c0_9] : memref<18x64xf32, #tpu.memory_space<vmem>>, vector<16x64xf32>
    %c0_10 = arith.constant 0 : index
    %c0_11 = arith.constant 0 : index
    %c0_12 = arith.constant 0 : index
    %10 = vector.load %arg2[%c0_10, %c0_11, %c0_12] : memref<3x64x256xf32, #tpu.memory_space<vmem>>, vector<1x64x256xf32>
    %11 = vector.shape_cast %10 : vector<1x64x256xf32> to vector<64x256xf32>
    %cst_13 = arith.constant dense<0.000000e+00> : vector<16x256xf32>
    %12 = tpu.matmul %9, %11, %cst_13 {dimension_numbers = #tpu.dot_dimension_numbers<[1], [0], [0], [1], [0, 0, 1, 1], [], []>} : vector<16x64xf32>, vector<64x256xf32>, vector<16x256xf32> -> vector<16x256xf32>
    %13 = arith.addf %8, %12 : vector<16x256xf32>
    %c1_14 = arith.constant 1 : index
    %c0_15 = arith.constant 0 : index
    %14 = vector.load %arg7[%c1_14, %c0_15] : memref<18x64xf32, #tpu.memory_space<vmem>>, vector<16x64xf32>
    %c1_16 = arith.constant 1 : index
    %c0_17 = arith.constant 0 : index
    %c0_18 = arith.constant 0 : index
    %15 = vector.load %arg2[%c1_16, %c0_17, %c0_18] : memref<3x64x256xf32, #tpu.memory_space<vmem>>, vector<1x64x256xf32>
    %16 = vector.shape_cast %15 : vector<1x64x256xf32> to vector<64x256xf32>
    %cst_19 = arith.constant dense<0.000000e+00> : vector<16x256xf32>
    %17 = tpu.matmul %14, %16, %cst_19 {dimension_numbers = #tpu.dot_dimension_numbers<[1], [0], [0], [1], [0, 0, 1, 1], [], []>} : vector<16x64xf32>, vector<64x256xf32>, vector<16x256xf32> -> vector<16x256xf32>
    %18 = arith.addf %13, %17 : vector<16x256xf32>
    %c2 = arith.constant 2 : index
    %c0_20 = arith.constant 0 : index
    %19 = vector.load %arg7[%c2, %c0_20] : memref<18x64xf32, #tpu.memory_space<vmem>>, vector<16x64xf32>
    %c2_21 = arith.constant 2 : index
    %c0_22 = arith.constant 0 : index
    %c0_23 = arith.constant 0 : index
    %20 = vector.load %arg2[%c2_21, %c0_22, %c0_23] : memref<3x64x256xf32, #tpu.memory_space<vmem>>, vector<1x64x256xf32>
    %21 = vector.shape_cast %20 : vector<1x64x256xf32> to vector<64x256xf32>
    %cst_24 = arith.constant dense<0.000000e+00> : vector<16x256xf32>
    %22 = tpu.matmul %19, %21, %cst_24 {dimension_numbers = #tpu.dot_dimension_numbers<[1], [0], [0], [1], [0, 0, 1, 1], [], []>} : vector<16x64xf32>, vector<64x256xf32>, vector<16x256xf32> -> vector<16x256xf32>
    %23 = arith.addf %18, %22 : vector<16x256xf32>
    %24 = vector.extract_strided_slice %23 {offsets = [0, 0], sizes = [16, 128], strides = [1, 1]} : vector<16x256xf32> to vector<16x128xf32>
    %25 = vector.extract_strided_slice %23 {offsets = [0, 128], sizes = [16, 128], strides = [1, 1]} : vector<16x256xf32> to vector<16x128xf32>
    %cst_25 = arith.constant 0.000000e+00 : f32
    %26 = vector.broadcast %cst_25 : f32 to vector<16x128xf32>
    %27 = arith.cmpf ogt, %24, %26 : vector<16x128xf32>
    %cst_26 = arith.constant 0.000000e+00 : f32
    %28 = vector.broadcast %cst_26 : f32 to vector<16x128xf32>
    %29 = arith.minimumf %24, %28 : vector<16x128xf32>
    %30 = math.exp %29 : vector<16x128xf32>
    %cst_27 = arith.constant 1.000000e+00 : f32
    %31 = vector.broadcast %cst_27 : f32 to vector<16x128xf32>
    %32 = arith.subf %30, %31 : vector<16x128xf32>
    %33 = arith.select %27, %24, %32 : vector<16x128xi1>, vector<16x128xf32>
    %cst_28 = arith.constant 0.000000e+00 : f32
    %34 = vector.broadcast %cst_28 : f32 to vector<1x128xf32>
    %c0_29 = arith.constant 0 : index
    %c0_30 = arith.constant 0 : index
    %35 = vector.load %arg8[%c0_29, %c0_30] : memref<18x128xf32, #tpu.memory_space<vmem>>, vector<1x128xf32>
    tpu.vector_store %arg8[%c0_29, %c0_30], %34 {strides = array<i32>} : memref<18x128xf32, #tpu.memory_space<vmem>>, vector<1x128xf32>,
    %c17_31 = arith.constant 17 : index
    %c0_32 = arith.constant 0 : index
    %36 = vector.load %arg8[%c17_31, %c0_32] : memref<18x128xf32, #tpu.memory_space<vmem>>, vector<1x128xf32>
    tpu.vector_store %arg8[%c17_31, %c0_32], %34 {strides = array<i32>} : memref<18x128xf32, #tpu.memory_space<vmem>>, vector<1x128xf32>,
    %c1_33 = arith.constant 1 : index
    %c0_34 = arith.constant 0 : index
    %37 = vector.load %arg8[%c1_33, %c0_34] : memref<18x128xf32, #tpu.memory_space<vmem>>, vector<16x128xf32>
    tpu.vector_store %arg8[%c1_33, %c0_34], %33 {strides = array<i32>} : memref<18x128xf32, #tpu.memory_space<vmem>>, vector<16x128xf32>,
    %c0_35 = arith.constant 0 : index
    %c0_36 = arith.constant 0 : index
    %38 = vector.load %arg5[%c0_35, %c0_36] : memref<1x128xf32, #tpu.memory_space<vmem>>, vector<1x128xf32>
    %39 = vector.broadcast %38 : vector<1x128xf32> to vector<16x128xf32>
    %40 = arith.addf %25, %39 : vector<16x128xf32>
    %c0_37 = arith.constant 0 : index
    %c0_38 = arith.constant 0 : index
    %41 = vector.load %arg8[%c0_37, %c0_38] : memref<18x128xf32, #tpu.memory_space<vmem>>, vector<16x128xf32>
    %c0_39 = arith.constant 0 : index
    %c0_40 = arith.constant 0 : index
    %c0_41 = arith.constant 0 : index
    %42 = vector.load %arg4[%c0_39, %c0_40, %c0_41] : memref<3x128x128xf32, #tpu.memory_space<vmem>>, vector<1x128x128xf32>
    %43 = vector.shape_cast %42 : vector<1x128x128xf32> to vector<128x128xf32>
    %cst_42 = arith.constant dense<0.000000e+00> : vector<16x128xf32>
    %44 = tpu.matmul %41, %43, %cst_42 {dimension_numbers = #tpu.dot_dimension_numbers<[1], [0], [0], [1], [0, 0, 1, 1], [], []>} : vector<16x128xf32>, vector<128x128xf32>, vector<16x128xf32> -> vector<16x128xf32>
    %45 = arith.addf %40, %44 : vector<16x128xf32>
    %c1_43 = arith.constant 1 : index
    %c0_44 = arith.constant 0 : index
    %46 = vector.load %arg8[%c1_43, %c0_44] : memref<18x128xf32, #tpu.memory_space<vmem>>, vector<16x128xf32>
    %c1_45 = arith.constant 1 : index
    %c0_46 = arith.constant 0 : index
    %c0_47 = arith.constant 0 : index
    %47 = vector.load %arg4[%c1_45, %c0_46, %c0_47] : memref<3x128x128xf32, #tpu.memory_space<vmem>>, vector<1x128x128xf32>
    %48 = vector.shape_cast %47 : vector<1x128x128xf32> to vector<128x128xf32>
    %cst_48 = arith.constant dense<0.000000e+00> : vector<16x128xf32>
    %49 = tpu.matmul %46, %48, %cst_48 {dimension_numbers = #tpu.dot_dimension_numbers<[1], [0], [0], [1], [0, 0, 1, 1], [], []>} : vector<16x128xf32>, vector<128x128xf32>, vector<16x128xf32> -> vector<16x128xf32>
    %50 = arith.addf %45, %49 : vector<16x128xf32>
    %c2_49 = arith.constant 2 : index
    %c0_50 = arith.constant 0 : index
    %51 = vector.load %arg8[%c2_49, %c0_50] : memref<18x128xf32, #tpu.memory_space<vmem>>, vector<16x128xf32>
    %c2_51 = arith.constant 2 : index
    %c0_52 = arith.constant 0 : index
    %c0_53 = arith.constant 0 : index
    %52 = vector.load %arg4[%c2_51, %c0_52, %c0_53] : memref<3x128x128xf32, #tpu.memory_space<vmem>>, vector<1x128x128xf32>
    %53 = vector.shape_cast %52 : vector<1x128x128xf32> to vector<128x128xf32>
    %cst_54 = arith.constant dense<0.000000e+00> : vector<16x128xf32>
    %54 = tpu.matmul %51, %53, %cst_54 {dimension_numbers = #tpu.dot_dimension_numbers<[1], [0], [0], [1], [0, 0, 1, 1], [], []>} : vector<16x128xf32>, vector<128x128xf32>, vector<16x128xf32> -> vector<16x128xf32>
    %55 = arith.addf %50, %54 : vector<16x128xf32>
    %c0_55 = arith.constant 0 : index
    %c0_56 = arith.constant 0 : index
    %c0_57 = arith.constant 0 : index
    %56 = vector.load %arg6[%c0_55, %c0_56, %c0_57] : memref<1x16x128xf32, #tpu.memory_space<vmem>>, vector<1x16x128xf32>
    %57 = vector.shape_cast %56 : vector<1x16x128xf32> to vector<16x128xf32>
    %58 = vector.shape_cast %55 : vector<16x128xf32> to vector<1x16x128xf32>
    tpu.vector_store %arg6[%c0_55, %c0_56, %c0_57], %58 {strides = array<i32>} : memref<1x16x128xf32, #tpu.memory_space<vmem>>, vector<1x16x128xf32>,
    return
  }
  func.func @transform_0(%arg0: i32) -> (i32, i32, i32) {
    %c0_i32 = arith.constant 0 : i32
    %c0_i32_0 = arith.constant 0 : i32
    %c0_i32_1 = arith.constant 0 : i32
    return %arg0, %c0_i32, %c0_i32_0 : i32, i32, i32
  }
  func.func @transform_1(%arg0: i32) -> (i32, i32, i32) {
    %c0_i32 = arith.constant 0 : i32
    %c0_i32_0 = arith.constant 0 : i32
    %c0_i32_1 = arith.constant 0 : i32
    %c0_i32_2 = arith.constant 0 : i32
    return %c0_i32, %c0_i32_0, %c0_i32_1 : i32, i32, i32
  }
  func.func @transform_2(%arg0: i32) -> (i32, i32) {
    %c0_i32 = arith.constant 0 : i32
    %c0_i32_0 = arith.constant 0 : i32
    %c0_i32_1 = arith.constant 0 : i32
    return %c0_i32, %c0_i32_0 : i32, i32
  }
  func.func @transform_3(%arg0: i32) -> (i32, i32, i32) {
    %c0_i32 = arith.constant 0 : i32
    %c0_i32_0 = arith.constant 0 : i32
    %c0_i32_1 = arith.constant 0 : i32
    %c0_i32_2 = arith.constant 0 : i32
    return %c0_i32, %c0_i32_0, %c0_i32_1 : i32, i32, i32
  }
  func.func @transform_4(%arg0: i32) -> (i32, i32) {
    %c0_i32 = arith.constant 0 : i32
    %c0_i32_0 = arith.constant 0 : i32
    %c0_i32_1 = arith.constant 0 : i32
    return %c0_i32, %c0_i32_0 : i32, i32
  }
  func.func @transform_5(%arg0: i32) -> (i32, i32, i32) {
    %c0_i32 = arith.constant 0 : i32
    %c0_i32_0 = arith.constant 0 : i32
    %c0_i32_1 = arith.constant 0 : i32
    return %arg0, %c0_i32, %c0_i32_0 : i32, i32, i32
  }
}

</mosaic_0001>

<bundles_post_ra>
// kernel: resblock_forward.1
= control target key start
LH: loop header
LB: loop body
LE: loop exit
PB: predicated region body
PF: predicated region fallthrough
CT: control target
= control target key end

     0   :  { %10 = vsyncpa [#allocation5], 0  ;;  %s1429_s18 = smov 0   ;;  %s1674_s0 = inlined_call_operand.vmem [shape: f32[2,16,64], index: 0, kind: input, shape index: {}]   ;;  %s1675_s1 = inlined_call_operand.vmem [shape: f32[3,64,256], index: 1, kind: input, shape index: {}]   ;;  %s1676_s2 = inlined_call_operand.vmem [shape: f32[1,256], index: 2, kind: input, shape index: {}]   ;;  %s1677_s3 = inlined_call_operand.hbm [shape: f32[3,128,128], index: 3, kind: input, shape index: {}]   ;;  %s1678_s4 = inlined_call_operand.vmem [shape: f32[1,128], index: 4, kind: input, shape index: {}]   ;;  %s1679_s5 = inlined_call_operand.vmem [shape: f32[2,16,128], index: 5, kind: output, shape index: {}]  }
   0x1 LB: > { %s1435_s19 = sadd.s32 4294967295, %s1393_s18   ;;  %p960_p0 = scmp.ge.s32.totalorder %s1393_s18, 1  ;;  %s1393_s18 = sphi %s1429_s18, %s16_s18  }
   0x2   : > { %p157_p1 = scmp.lt.s32.totalorder %s1393_s18, 3  ;;  %s1395_s20 = smov [#allocation4]  }
   0x3   : > { %s175_s21 = sshll.u32 %s1395_s20, 4  ;;  %p1680_p3 = scmp.eq.s32.totalorder %s1435_s19, 0  ;;  %s176_s21 = int_to_ptr.vmem [resolvable:$true] %s175_s21 }
   0x4   : > { %p1439_p2 = pnand %p960_p0, %p157_p1  ;;  %s1355_s26 = scalar_lea.hbm %s1677_s3, 6144 }
   0x5   : > { %p1356_p6 = scmp.ne.s32.totalorder %s1677_s3, %s1355_s26  ;;  %p1362_p10 = scmp.lt.u32.totalorder %s1355_s26, %s1677_s3 }
   0x6   : > { %s1682_s22 = scalar_select %p1439_p2, 1, 0 }
   0x7   : > { %p1333_p4 = pneg %p1439_p2 }
   0x9   : > { %p1448_p5 = pnand %p1680_p3, %p1333_p4 }
   0xb   : > { %p1357_p7 = pneg %p1448_p5 }
   0xd   : > { %p1358_p8 = pnand %p1357_p7, %p1356_p6 }
   0xf   : > { %p1359_p9 = pneg %p1358_p8 }
  0x11   : > { %p1364_p11 = pnand %p1362_p10, %p1359_p9 }
  0x13   : > { %1367 = shalt.err (!%p1364_p11)
}
  0x14   : > { %s1368_s6 = scalar_lea.vmem %s176_s21, 6144  ;;  %p1376_p1 = scmp.lt.s32.totalorder %s176_s21, %s176_s21 }
  0x15   : > { %p1369_p12 = scmp.ne.s32.totalorder %s176_s21, %s1368_s6  ;;  %p1377_p4 = scmp.lt.s32.totalorder %s1368_s6, %s1368_s6 }
  0x17   : > { %p1371_p13 = pnand %p1369_p12, %p1357_p7  ;;  %p1378_p3 = por %p1377_p4, %p1376_p1 }
  0x19   : > { %p1372_p0 = pneg %p1371_p13 }
  0x1b   : > { %p1379_p2 = pnand %p1378_p3, %p1372_p0 }
  0x1d   : > { %1382 = shalt.err (!%p1379_p2)
}
  0x1e   : > { %s1396_s7 = smov 128   ;;  %s1397_s8 = smov 8  }
  0x1f   : > { %1336 = dma.hbm_to_vmem [thread:$0]  (!%p1448_p5), %s1677_s3, 6144, %s176_s21, [#allocation5], %s1396_s7, %s1396_s7, %s1397_s8  }
  0x20   : > { %p1684_p6 = scmp.ne.s32.totalorder %s1682_s22, 0 }
  0x21   : > { %p1685_p8 = scmp.eq.s32.totalorder (!%p1684_p6), %s1435_s19, 0 }
  0x22   : > { %202 = sbr.rel (%p1684_p6) target bundleno = 587 (0x24b), region = 40 }
  0x29   : > { %1388 = dma.done.wait (%p1685_p8), [#allocation5], 6144   ;;  %p1686_p7 = pmov %p1685_p8 }
  0x2a   : > { %p230_p2 = scmp.lt.s32.totalorder %s1435_s19, 1  ;;  %vm240_vm0 = vcmask 516096   ;;  %v1398_v0 = vmov 0.0   ;;  %v263_v1 = vld [vmem:[%s1675_s1 + $0x8] sm:$0xff]  ;;  %v265_v2 = vld [vmem:[%s1675_s1 + $0x18] sm:$0xff]  ;;  %v262_v3 = vld [vmem:[%s1675_s1] sm:$0xff] }
  0x2b   : > { %1390 = vsyncadd (%p1686_p7), [#allocation5], 4294961152  ;;  %348 = vmatprep.mubr.f32.mxu0 %v1398_v0  ;;  %589 = vst [vmem:[#allocation3] sm:$0x1] %v1398_v0  ;;  %v1173_v4 = vpack.c.bf16 %v265_v2, %v263_v1  ;;  %v264_v5 = vld [vmem:[%s1675_s1 + $0x10] sm:$0xff]  ;;  %v267_v6 = vld [vmem:[%s1675_s1 + $0x28] sm:$0xff] }
  0x2c   : > { %590 = vst [vmem:[#allocation3 + $0x11] sm:$0x1] %v1398_v0  ;;  %241 = vst.msk [vmem:[#allocation2] sm:$0x1] %vm240_vm0, %v1398_v0  ;;  %s1688_s19 = smov (!%p230_p2, %s1435_s19), 1  ;;  %v269_v7 = vld [vmem:[%s1675_s1 + $0x38] sm:$0xff]  ;;  %v1175_v8 = vpack.c.bf16 %v264_v5, %v262_v3 }
  0x2d   : > { %242 = vst.msk [vmem:[#allocation2 + $0x11] sm:$0x1] %vm240_vm0, %v1398_v0  ;;  %s1012_s17 = sshll.u32 %s1688_s19, 4  ;;  %v1177_v9 = vpack.c.bf16 %v269_v7, %v267_v6  ;;  %v266_v10 = vld [vmem:[%s1675_s1 + $0x20] sm:$0xff]  ;;  %v268_v11 = vld [vmem:[%s1675_s1 + $0x30] sm:$0xff]  ;;  %v271_v12 = vld [vmem:[%s1675_s1 + $0x48] sm:$0xff]  ;;  %1174 = vmatprep.subr.bf16.mxu0 %v1173_v4 }
  0x2e   : > { %v273_v13 = vld [vmem:[%s1675_s1 + $0x58] sm:$0xff]  ;;  %s234_s11 = scalar_lea.vmem %s1674_s0, %s1012_s17  ;;  %1176 = vmatpush1.bf16.msra.mxu0 %v1175_v8  ;;  %v1179_v14 = vpack.c.bf16 %v268_v11, %v266_v10  ;;  %vm245_vm1 = vcmask 523264   ;;  %v270_v16 = vld [vmem:[%s1675_s1 + $0x40] sm:$0xff]  ;;  %v272_v17 = vld [vmem:[%s1675_s1 + $0x50] sm:$0xff]  ;;  %s239_s6 = scalar_lea.vmem %s1679_s5, %s1012_s17 }
  0x2f   : > { %1178 = vmatprep.subr.bf16.mxu0 %v1177_v9  ;;  %v1181_v15 = vpack.c.bf16 %v273_v13, %v271_v12  ;;  %v275_v18 = vld [vmem:[%s1675_s1 + $0x68] sm:$0xff]  ;;  %v277_v19 = vld [vmem:[%s1675_s1 + $0x78] sm:$0xff]  ;;  %v243_v20 = vld [vmem:[%s234_s11] sm:$0xff]  ;;  %v1183_v22 = vpack.c.bf16 %v272_v17, %v270_v16 }
  0x30   : > { %v244_v21 = vld [vmem:[%s234_s11 + $0x8] sm:$0xff]  ;;  %246 = vst.msk [vmem:[#allocation2 + $0x1] sm:$0xff] %vm245_vm1, %v243_v20  ;;  %v1185_v23 = vpack.c.bf16 %v277_v19, %v275_v18  ;;  %v274_v24 = vld [vmem:[%s1675_s1 + $0x60] sm:$0xff]  ;;  %v276_v25 = vld [vmem:[%s1675_s1 + $0x70] sm:$0xff] }
  0x31   : > { %247 = vst.msk [vmem:[#allocation2 + $0x9] sm:$0xff] %vm245_vm1, %v244_v21  ;;  %v972_v26 = vld [vmem:[%s1675_s1 + $0x88] sm:$0xff]  ;;  %v974_v27 = vld [vmem:[%s1675_s1 + $0x98] sm:$0xff]  ;;  %v1187_v28 = vpack.c.bf16 %v276_v25, %v274_v24  ;;  %v971_v30 = vld [vmem:[%s1675_s1 + $0x80] sm:$0xff] }
  0x32   : > { %1180 = vmatpush1.bf16.msra.mxu0 %v1179_v14  ;;  %v1189_v29 = vpack.c.bf16 %v974_v27, %v972_v26  ;;  %v973_v31 = vld [vmem:[%s1675_s1 + $0x90] sm:$0xff]  ;;  %v976_v32 = vld [vmem:[%s1675_s1 + $0xa8] sm:$0xff]  ;;  %v978_v33 = vld [vmem:[%s1675_s1 + $0xb8] sm:$0xff] }
  0x33   : > { %1182 = vmatprep.subr.bf16.mxu0 %v1181_v15  ;;  %v1191_v35 = vpack.c.bf16 %v973_v31, %v971_v30  ;;  %v1193_v36 = vpack.c.bf16 %v978_v33, %v976_v32  ;;  %v975_v37 = vld [vmem:[%s1675_s1 + $0xa0] sm:$0xff]  ;;  %v977_v38 = vld [vmem:[%s1675_s1 + $0xb0] sm:$0xff]  ;;  %v980_v39 = vld [vmem:[%s1675_s1 + $0xc8] sm:$0xff] }
  0x34   : > { %v982_v40 = vld [vmem:[%s1675_s1 + $0xd8] sm:$0xff]  ;;  %v1195_v41 = vpack.c.bf16 %v977_v38, %v975_v37  ;;  %v979_v44 = vld [vmem:[%s1675_s1 + $0xc0] sm:$0xff]  ;;  %v981_v45 = vld [vmem:[%s1675_s1 + $0xd0] sm:$0xff] }
  0x35   : > { %v1197_v43 = vpack.c.bf16 %v982_v40, %v980_v39  ;;  %v984_v46 = vld [vmem:[%s1675_s1 + $0xe8] sm:$0xff]  ;;  %v986_v47 = vld [vmem:[%s1675_s1 + $0xf8] sm:$0xff]  ;;  %v1199_v48 = vpack.c.bf16 %v981_v45, %v979_v44  ;;  %v983_v50 = vld [vmem:[%s1675_s1 + $0xe0] sm:$0xff] }
  0x36   : > { %1184 = vmatpush1.bf16.msra.mxu0 %v1183_v22  ;;  %v1201_v49 = vpack.c.bf16 %v986_v47, %v984_v46  ;;  %v985_v51 = vld [vmem:[%s1675_s1 + $0xf0] sm:$0xff]  ;;  %v990_v52 = vld [vmem:[%s1675_s1 + $0x108] sm:$0xff]  ;;  %v992_v53 = vld [vmem:[%s1675_s1 + $0x118] sm:$0xff] }
  0x37   : > { %1186 = vmatprep.subr.bf16.mxu0 %v1185_v23  ;;  %v260_v34 = vld [vmem:[#allocation2] sm:$0xff]  ;;  %v1203_v54 = vpack.c.bf16 %v985_v51, %v983_v50  ;;  %v1205_v55 = vpack.c.bf16 %v992_v53, %v990_v52  ;;  %v991_v57 = vld [vmem:[%s1675_s1 + $0x110] sm:$0xff]  ;;  %v994_v58 = vld [vmem:[%s1675_s1 + $0x128] sm:$0xff] }
  0x38   : > { %v261_v42 = vld [vmem:[#allocation2 + $0x8] sm:$0xff]  ;;  %v989_v56 = vld [vmem:[%s1675_s1 + $0x100] sm:$0xff]  ;;  %v996_v59 = vld [vmem:[%s1675_s1 + $0x138] sm:$0xff] }
  0x39   : > { %v365_v60 = vld [vmem:[#allocation2 + $0x1] sm:$0xff]  ;;  %v1207_v61 = vpack.c.bf16 %v991_v57, %v989_v56  ;;  %v1209_v62 = vpack.c.bf16 %v996_v59, %v994_v58  ;;  %v995_v1 = vld [vmem:[%s1675_s1 + $0x130] sm:$0xff]  ;;  %v1000_v3 = vld [vmem:[%s1675_s1 + $0x158] sm:$0xff] }
  0x3a   : > { %1188 = vmatpush1.bf16.msra.mxu0 %v1187_v28  ;;  %v993_v63 = vld [vmem:[%s1675_s1 + $0x120] sm:$0xff]  ;;  %v998_v2 = vld [vmem:[%s1675_s1 + $0x148] sm:$0xff]  ;;  %v999_v8 = vld [vmem:[%s1675_s1 + $0x150] sm:$0xff] }
  0x3b   : > { %1190 = vmatprep.subr.bf16.mxu0 %v1189_v29  ;;  %v1211_v4 = vpack.c.bf16 %v995_v1, %v993_v63  ;;  %v366_v5 = vld [vmem:[#allocation2 + $0x9] sm:$0xff]  ;;  %v1213_v6 = vpack.c.bf16 %v1000_v3, %v998_v2  ;;  %v997_v7 = vld [vmem:[%s1675_s1 + $0x140] sm:$0xff]  ;;  %v1004_v10 = vld [vmem:[%s1675_s1 + $0x178] sm:$0xff] }
  0x3c   : > { %v1002_v9 = vld [vmem:[%s1675_s1 + $0x168] sm:$0xff]  ;;  %v1215_v11 = vpack.c.bf16 %v999_v8, %v997_v7  ;;  %v1001_v13 = vld [vmem:[%s1675_s1 + $0x160] sm:$0xff]  ;;  %v1003_v14 = vld [vmem:[%s1675_s1 + $0x170] sm:$0xff] }
  0x3d   : > { %969 = vmatmul.mubr.msk.f32.vlgmr.msra.gmra.mrb[0].mxu0 %vm245_vm1, %v260_v34  ;;  %v1217_v12 = vpack.c.bf16 %v1004_v10, %v1002_v9  ;;  %v1219_v15 = vpack.c.bf16 %v1003_v14, %v1001_v13  ;;  %v471_v16 = vld [vmem:[#allocation2 + $0x2] sm:$0xff]  ;;  %v472_v17 = vld [vmem:[#allocation2 + $0xa] sm:$0xff]  ;;  %v605_v19 = vld [vmem:[#allocation4 + $0x8] sm:$0xff] }
  0x3e   : > { %1192 = vmatpush1.bf16.msra.mxu0 %v1191_v35  ;;  %354 = vmatprep.mubr.f32.mxu0 %v1398_v0  ;;  %v604_v18 = vld [vmem:[#allocation4] sm:$0xff]  ;;  %v797_v22 = vld [vmem:[#allocation4 + $0x108] sm:$0xff]  ;;  %v606_v24 = vld [vmem:[#allocation4 + $0x10] sm:$0xff] }
  0x3f   : > { %1194 = vmatprep.subr.bf16.mxu0 %v1193_v36  ;;  %v1221_v20 = vpack.c.bf16 %v605_v19, %v604_v18  ;;  %v796_v21 = vld [vmem:[#allocation4 + $0x100] sm:$0xff]  ;;  %v607_v25 = vld [vmem:[#allocation4 + $0x18] sm:$0xff]  ;;  %v798_v27 = vld [vmem:[#allocation4 + $0x110] sm:$0xff] }
  0x40   : > { %v1285_v23 = vpack.c.bf16 %v797_v22, %v796_v21  ;;  %v1225_v26 = vpack.c.bf16 %v607_v25, %v606_v24  ;;  %v799_v28 = vld [vmem:[#allocation4 + $0x118] sm:$0xff]  ;;  %v608_v29 = vld [vmem:[#allocation4 + $0x20] sm:$0xff]  ;;  %v609_v30 = vld [vmem:[#allocation4 + $0x28] sm:$0xff] }
  0x41   : > { %970 = vmatmul.mubr.msk.f32.gmra.mrb[2].mxu0 %vm245_vm1, %v261_v42  ;;  %1222 = vmatprep.subr.bf16.mxu1 %v1221_v20  ;;  %v1229_v31 = vpack.c.bf16 %v609_v30, %v608_v29  ;;  %v800_v32 = vld [vmem:[#allocation4 + $0x120] sm:$0xff]  ;;  %v801_v33 = vld [vmem:[#allocation4 + $0x128] sm:$0xff]  ;;  %v610_v35 = vld [vmem:[#allocation4 + $0x30] sm:$0xff] }
  0x42   : > { %1196 = vmatpush1.bf16.msra.mxu0 %v1195_v41  ;;  %454 = vmatprep.mubr.f32.mxu0 %v1398_v0  ;;  %v1293_v34 = vpack.c.bf16 %v801_v33, %v800_v32  ;;  %v611_v36 = vld [vmem:[#allocation4 + $0x38] sm:$0xff]  ;;  %v802_v38 = vld [vmem:[#allocation4 + $0x130] sm:$0xff]  ;;  %v612_v41 = vld [vmem:[#allocation4 + $0x40] sm:$0xff] }
  0x43   : > { %1198 = vmatprep.subr.bf16.mxu0 %v1197_v43  ;;  %1224 = vmatpush3.bf16.msra.mxu1 %v1221_v20  ;;  %v1233_v37 = vpack.c.bf16 %v611_v36, %v610_v35  ;;  %v803_v39 = vld [vmem:[#allocation4 + $0x138] sm:$0xff]  ;;  %v613_v42 = vld [vmem:[#allocation4 + $0x48] sm:$0xff]  ;;  %v804_v44 = vld [vmem:[#allocation4 + $0x140] sm:$0xff] }
  0x44   : > { %1226 = vmatprep.subr.bf16.mxu1 %v1225_v26  ;;  %v1297_v40 = vpack.c.bf16 %v803_v39, %v802_v38  ;;  %v1237_v43 = vpack.c.bf16 %v613_v42, %v612_v41  ;;  %v805_v45 = vld [vmem:[#allocation4 + $0x148] sm:$0xff]  ;;  %v614_v47 = vld [vmem:[#allocation4 + $0x50] sm:$0xff]  ;;  %v807_v51 = vld [vmem:[#allocation4 + $0x158] sm:$0xff] }
  0x45   : > { %v1301_v46 = vpack.c.bf16 %v805_v45, %v804_v44  ;;  %v806_v50 = vld [vmem:[#allocation4 + $0x150] sm:$0xff]  ;;  %v616_v53 = vld [vmem:[#allocation4 + $0x60] sm:$0xff]  ;;  %v809_v57 = vld [vmem:[#allocation4 + $0x168] sm:$0xff] }
  0x46   : > { %1200 = vmatpush1.bf16.msra.mxu0 %v1199_v48  ;;  %v615_v48 = vld [vmem:[#allocation4 + $0x58] sm:$0xff]  ;;  %v1305_v52 = vpack.c.bf16 %v807_v51, %v806_v50  ;;  %v808_v56 = vld [vmem:[#allocation4 + $0x160] sm:$0xff]  ;;  %v618_v59 = vld [vmem:[#allocation4 + $0x70] sm:$0xff] }
  0x47   : > { %1202 = vmatprep.subr.bf16.mxu0 %v1201_v49  ;;  %1228 = vmatpush3.bf16.msra.mxu1 %v1225_v26  ;;  %v1241_v49 = vpack.c.bf16 %v615_v48, %v614_v47  ;;  %v1309_v58 = vpack.c.bf16 %v809_v57, %v808_v56  ;;  %v811_v63 = vld [vmem:[#allocation4 + $0x178] sm:$0xff]  ;;  %v700_v2 = vld [vmem:[#allocation4 + $0x80] sm:$0xff]  ;;  %v701_v3 = vld [vmem:[#allocation4 + $0x88] sm:$0xff] }
  0x48   : > { %1230 = vmatprep.subr.bf16.mxu1 %v1229_v31  ;;  %v1652_v8 = vld [vmem:[%s1676_s2] sm:$0x3]  ;;  %v704_v29 = vld [vmem:[#allocation4 + $0xa0] sm:$0xff]  ;;  %v705_v30 = vld [vmem:[#allocation4 + $0xa8] sm:$0xff] }
  0x49   : > { %v706_v35 = vld [vmem:[#allocation4 + $0xb0] sm:$0xff]  ;;  %v707_v36 = vld [vmem:[#allocation4 + $0xb8] sm:$0xff]  ;;  %v708_v38 = vld [vmem:[#allocation4 + $0xc0] sm:$0xff] }
  0x4a   : > { %1204 = vmatpush1.bf16.msra.mxu0 %v1203_v54  ;;  %v617_v54 = vld [vmem:[#allocation4 + $0x68] sm:$0xff]  ;;  %v710_v41 = vld [vmem:[#allocation4 + $0xd0] sm:$0xff]  ;;  %v711_v42 = vld [vmem:[#allocation4 + $0xd8] sm:$0xff] }
  0x4b   : > { %1206 = vmatprep.subr.bf16.mxu0 %v1205_v55  ;;  %1232 = vmatpush3.bf16.msra.mxu1 %v1229_v31  ;;  %v1245_v55 = vpack.c.bf16 %v617_v54, %v616_v53  ;;  %v709_v39 = vld [vmem:[#allocation4 + $0xc8] sm:$0xff]  ;;  %v712_v44 = vld [vmem:[#allocation4 + $0xe0] sm:$0xff]  ;;  %v714_v47 = vld [vmem:[#allocation4 + $0xf0] sm:$0xff] }
  0x4c   : > { %1234 = vmatprep.subr.bf16.mxu1 %v1233_v37  ;;  %v713_v45 = vld [vmem:[#allocation4 + $0xe8] sm:$0xff]  ;;  %v715_v48 = vld [vmem:[#allocation4 + $0xf8] sm:$0xff]  ;;  %v1009_v54 = vld [vmem:[%s1678_s4] ss:$0 sm:$0xff] }
  0x4d   : > { %987 = vmatmul.mubr.msk.f32.vlgmr.msra.gmra.mrb[0].mxu0 %vm245_vm1, %v365_v60  ;;  %v619_v60 = vld [vmem:[#allocation4 + $0x78] sm:$0xff] }
  0x4e   : > { %1208 = vmatpush1.bf16.msra.mxu0 %v1207_v61  ;;  %460 = vmatprep.mubr.f32.mxu0 %v1398_v0  ;;  %v1249_v61 = vpack.c.bf16 %v619_v60, %v618_v59 }
  0x4f   : > { %1210 = vmatprep.subr.bf16.mxu0 %v1209_v62  ;;  %1236 = vmatpush3.bf16.msra.mxu1 %v1233_v37  ;;  %v810_v62 = vld [vmem:[#allocation4 + $0x170] sm:$0xff]  ;;  %v1265_v37 = vpack.c.bf16 %v707_v36, %v706_v35 }
  0x50   : > { %1238 = vmatprep.subr.bf16.mxu1 %v1237_v43  ;;  %v1313_v1 = vpack.c.bf16 %v811_v63, %v810_v62 }
  0x51   : > { %988 = vmatmul.mubr.msk.f32.gmra.mrb[2].mxu0 %vm245_vm1, %v366_v5  ;;  %v250_v5 = vlaneseq }
  0x52   : > { %1212 = vmatpush1.bf16.msra.mxu0 %v1211_v4  ;;  %560 = vmatprep.mubr.f32.mxu0 %v1398_v0  ;;  %v1253_v4 = vpack.c.bf16 %v701_v3, %v700_v2 }
  0x53   : > { %1214 = vmatprep.subr.bf16.mxu0 %v1213_v6  ;;  %1240 = vmatpush3.bf16.msra.mxu1 %v1237_v43  ;;  %v1646_v6 = vshrl.u32 %v250_v5, 7  ;;  %v1273_v43 = vpack.c.bf16 %v711_v42, %v710_v41 }
  0x54   : > { %1242 = vmatprep.subr.bf16.mxu1 %v1241_v49 }
  0x55   : > { %v252_v7 = vsub.s32 0, %v1646_v6  ;;  %v256_v50 = vsub.s32 1, %v1646_v6 }
  0x56   : > { %1216 = vmatpush1.bf16.msra.mxu0 %v1215_v11 }
  0x57   : > { %1218 = vmatprep.subr.bf16.mxu0 %v1217_v12  ;;  %1244 = vmatpush3.bf16.msra.mxu1 %v1241_v49  ;;  %v253_v9 = vrot.slane %v1652_v8, %v252_v7  ;;  %v1281_v49 = vpack.c.bf16 %v715_v48, %v714_v47  ;;  %v257_v51 = vrot.slane %v1652_v8, %v256_v50 }
  0x58   : > { %1246 = vmatprep.subr.bf16.mxu1 %v1245_v55 }
  0x5a   : > { %1220 = vmatpush1.bf16.msra.mxu0 %v1219_v15 }
  0x5b   : > { %1286 = vmatprep.subr.bf16.mxu0 %v1285_v23  ;;  %1248 = vmatpush3.bf16.msra.mxu1 %v1245_v55 }
  0x5c   : > { %1250 = vmatprep.subr.bf16.mxu1 %v1249_v61 }
  0x5d   : > { %1005 = vmatmul.mubr.msk.f32.vlgmr.msra.gmra.mrb[0].mxu0 %vm245_vm1, %v471_v16 }
  0x5e   : > { %566 = vmatprep.mubr.f32.mxu0 %v1398_v0  ;;  %1288 = vmatpush3.bf16.msra.mxu0 %v1285_v23  ;;  %v1289_v0 = vpack.c.bf16 %v799_v28, %v798_v27  ;;  %v702_v27 = vld [vmem:[#allocation4 + $0x90] sm:$0xff]  ;;  %v703_v28 = vld [vmem:[#allocation4 + $0x98] sm:$0xff] }
  0x5f   : > { %1252 = vmatpush3.bf16.msra.mxu1 %v1249_v61 }
  0x60   : > { %1290 = vmatprep.subr.bf16.mxu0 %v1289_v0  ;;  %1254 = vmatprep.subr.bf16.mxu1 %v1253_v4 }
  0x61   : > { %1006 = vmatmul.mubr.msk.f32.gmra.mrb[2].mxu0 %vm245_vm1, %v472_v17 }
  0x62   : > { %1292 = vmatpush3.bf16.msra.mxu0 %v1289_v0  ;;  %v1257_v0 = vpack.c.bf16 %v703_v28, %v702_v27 }
  0x63   : > { %1294 = vmatprep.subr.bf16.mxu0 %v1293_v34 }
  0x66   : > { %1296 = vmatpush3.bf16.msra.mxu0 %v1293_v34  ;;  %v1261_v34 = vpack.c.bf16 %v705_v30, %v704_v29 }
  0x67   : > { %1298 = vmatprep.subr.bf16.mxu0 %v1297_v40 }
  0x6a   : > { %1300 = vmatpush3.bf16.msra.mxu0 %v1297_v40  ;;  %v1269_v40 = vpack.c.bf16 %v709_v39, %v708_v38 }
  0x6b   : > { %1302 = vmatprep.subr.bf16.mxu0 %v1301_v46 }
  0x6e   : > { %1304 = vmatpush3.bf16.msra.mxu0 %v1301_v46  ;;  %v1277_v46 = vpack.c.bf16 %v713_v45, %v712_v44 }
  0x6f   : > { %1306 = vmatprep.subr.bf16.mxu0 %v1305_v52 }
  0x72   : > { %1308 = vmatpush3.bf16.msra.mxu0 %v1305_v52 }
  0x73   : > { %1310 = vmatprep.subr.bf16.mxu0 %v1309_v58 }
  0x76   : > { %1312 = vmatpush3.bf16.msra.mxu0 %v1309_v58 }
  0x77   : > { %1314 = vmatprep.subr.bf16.mxu0 %v1313_v1 }
  0x7a   : > { %1316 = vmatpush3.bf16.msra.mxu0 %v1313_v1 }
 0x130   : > { %v562_v10 = vpop.f32.mrb[0].mxu0 }
 0x131   : > { %v1317_v11 = vadd.f32 %v562_v10, %v253_v9  ;;  %v1655_v12 = vpop.f32.mrb[1].mxu0 }
 0x132   : > { %v1318_v53 = vadd.f32 %v1655_v12, %v257_v51 }
 0x133   : > { %v579_v13 = vmin.f32 %v1317_v11, 0.0  ;;  %vm577_vm2 = vcmp.gt.f32.partialorder %v1317_v11, 0.0 }
 0x134   : > { %v568_v14 = vpop.f32.mrb[2].mxu0  ;;  %v600_v57 = vadd.f32 %v1318_v53, %v1009_v54 }
 0x135   : > { %v581_v15 = vmul.f32 1.442695, %v579_v13  ;;  %v1319_v16 = vadd.f32 %v568_v14, %v253_v9  ;;  %v1657_v17 = vpop.f32.mrb[3].mxu0 }
 0x136   : > { %v1320_v52 = vadd.f32 %v1657_v17, %v257_v51 }
 0x137   : > { %1351 = vpow2.f32 %v581_v15  ;;  %v580_v18 = vmin.f32 %v1319_v16, 0.0  ;;  %vm578_vm3 = vcmp.gt.f32.partialorder %v1319_v16, 0.0 }
 0x138   : > { %v601_v55 = vadd.f32 %v1320_v52, %v1009_v54 }
 0x139   : > { %v583_v19 = vmul.f32 1.442695, %v580_v18 }
 0x13b   : > { %1353 = vpow2.f32 %v583_v19 }
 0x141   : > { %v1352_v20 = vpop.eup %1351 }
 0x142   : > { %v1007_v21 = vadd.f32 -1.0, %v1352_v20 }
 0x144   : > { %v587_v22 = vsel %vm577_vm2, %v1317_v11, %v1007_v21 }
 0x145   : > { %v1354_v23 = vpop.eup %1353  ;;  %591 = vst [vmem:[#allocation3 + $0x1] sm:$0xff] %v587_v22 }
 0x146   : > { %v1008_v24 = vadd.f32 -1.0, %v1354_v23 }
 0x148   : > { %v588_v25 = vsel %vm578_vm3, %v1319_v16, %v1008_v24 }
 0x149   : > { %592 = vst [vmem:[#allocation3 + $0x9] sm:$0xff] %v588_v25 }
 0x14c   : > { %v602_v26 = vld [vmem:[#allocation3] sm:$0xff] }
 0x14d   : > { %1100 = vmatprep.mubr.f32.mxu1 %v602_v26 }
 0x150   : > { %v603_v31 = vld [vmem:[#allocation3 + $0x8] sm:$0xff] }
 0x151   : > { %v793_v32 = vld [vmem:[#allocation3 + $0x2] sm:$0xff]  ;;  %v794_v33 = vld [vmem:[#allocation3 + $0xa] sm:$0xff]  ;;  %1101 = vmatmul.mubr.f32.vlgmr.msra.gmra.mrb[0].mxu1 %v603_v31 }
 0x152   : > { %1170 = vmatprep.mubr.f32.mxu0 %v793_v32  ;;  %1256 = vmatpush3.bf16.msra.mxu1 %v1253_v4 }
 0x153   : > { %1135 = vmatprep.mubr.f32.mxu1 %v587_v22  ;;  %1171 = vmatmul.mubr.f32.vlgmr.msra.gmra.mrb[4].mxu0 %v794_v33 }
 0x154   : > { %1258 = vmatprep.subr.bf16.mxu1 %v1257_v0 }
 0x156   : > { %1260 = vmatpush3.bf16.msra.mxu1 %v1257_v0 }
 0x157   : > { %1262 = vmatprep.subr.bf16.mxu1 %v1261_v34 }
 0x15a   : > { %1264 = vmatpush3.bf16.msra.mxu1 %v1261_v34 }
 0x15b   : > { %1266 = vmatprep.subr.bf16.mxu1 %v1265_v37 }
 0x15e   : > { %1268 = vmatpush3.bf16.msra.mxu1 %v1265_v37 }
 0x15f   : > { %1270 = vmatprep.subr.bf16.mxu1 %v1269_v40 }
 0x162   : > { %1272 = vmatpush3.bf16.msra.mxu1 %v1269_v40 }
 0x163   : > { %1274 = vmatprep.subr.bf16.mxu1 %v1273_v43 }
 0x166   : > { %1276 = vmatpush3.bf16.msra.mxu1 %v1273_v43 }
 0x167   : > { %1278 = vmatprep.subr.bf16.mxu1 %v1277_v46 }
 0x16a   : > { %1280 = vmatpush3.bf16.msra.mxu1 %v1277_v46 }
 0x16b   : > { %1282 = vmatprep.subr.bf16.mxu1 %v1281_v49 }
 0x16e   : > { %1284 = vmatpush3.bf16.msra.mxu1 %v1281_v49 }
 0x171   : > { %1136 = vmatmul.mubr.f32.vlgmr.msra.gmra.mrb[2].mxu1 %v588_v25 }
 0x224   : > { %v1102_v56 = vpop.f32.mrb[0].mxu1 }
 0x225   : > { %v696_v58 = vadd.f32 %v1102_v56, %v601_v55  ;;  %v686_v59 = vpop.f32.mrb[1].mxu1 }
 0x226   : > { %v695_v60 = vadd.f32 %v686_v59, %v600_v57  ;;  %v1172_v61 = vpop.f32.mrb[4].mxu0 }
 0x227   : > { %v878_v62 = vpop.f32.mrb[5].mxu0 }
 0x244   : > { %v1137_v63 = vpop.f32.mrb[2].mxu1 }
 0x245   : > { %v792_v1 = vadd.f32 %v1137_v63, %v696_v58  ;;  %v782_v2 = vpop.f32.mrb[3].mxu1 }
 0x246   : > { %v791_v3 = vadd.f32 %v782_v2, %v695_v60 }
 0x247   : > { %v888_v4 = vadd.f32 %v1172_v61, %v792_v1 }
 0x248   : > { %v887_v5 = vadd.f32 %v878_v62, %v791_v3 }
 0x249   : > { %890 = vst [vmem:[%s239_s6 + $0x8] sm:$0xff] %v888_v4 }
 0x24a   : > { %889 = vst [vmem:[%s239_s6] sm:$0xff] %v887_v5 }
 0x24b PF: > { %s16_s18 = sadd.s32 1, %s1393_s18  }
 0x24c   : > { %p13_p3 = scmp.ge.s32.totalorder %s16_s18, 4  }
 0x24e   :  { %15 = sbr.rel (!%p13_p3) target bundleno = 1 (0x1), region = 79 }
 0x255   :  { %912 = vsyncpa [#allocation5], 1 }
 0x256   :  { %914 = vsyncpa [#allocation5 + $0x1], 1 }

</bundles_post_ra>
